<compile_context>
chip_gen: v6e
topology: v6e:2x2x1
jax: 0.10.0
libtpu: 0.0.40
codegen_flags: <defaults>
</compile_context>

<pallas_src>
import jax
import jax.numpy as jnp
from jax.experimental import pallas as pl
from jax.experimental.pallas import tpu as pltpu

HID1 = 128
HID2 = 64

# Default max rows per grid step.  At tb=2048 the per-step VMEM footprint
# (bf16 x + f32 temporaries + tiny weights, double-buffered x/out) is only a
# few MiB -- comfortably inside the scoped-VMEM defaults of v5e (16 MiB),
# v6e (32 MiB) and v7x (32 of 64 MiB physical) -- while being large enough
# (>=512 rows) to reach ~85% of the HBM roofline and amortize the ~0.35 us
# per-grid-step overhead.  Large batches therefore get grid > 1, so the
# BlockSpec pipeline double-buffers x/out DMA against compute and the
# "parallel" batch axis can be sharded across v7x's two TensorCores.
_DEFAULT_MAX_BATCH_TILE = 2048


def _round_up(n, m):
    return ((n + m - 1) // m) * m


def _mlp_softmax_kernel(x_ref, w1_ref, b1_ref, w2_ref, b2_ref, w3_ref, b3_ref,
                        o_ref):
    x = x_ref[...]                      # (tb, C_in) in compute dtype (bf16/f32)
    cdt = x.dtype

    # fc_in + ReLU (dropout == identity in eval mode). MXU matmul, f32 accum.
    h1 = jnp.dot(x, w1_ref[...], preferred_element_type=jnp.float32)
    h1 = jnp.maximum(h1 + b1_ref[...], 0.0)

    # fc_1 + ReLU (dropout == identity in eval mode).
    h2 = jnp.dot(h1.astype(cdt), w2_ref[...],
                 preferred_element_type=jnp.float32)
    h2 = jnp.maximum(h2 + b2_ref[...], 0.0)

    # fc_out
    logits = jnp.dot(h2.astype(cdt), w3_ref[...],
                     preferred_element_type=jnp.float32)
    logits = logits + b3_ref[...]

    # Numerically stable softmax over last dim.  Reciprocal goes to the EUP
    # slot (otherwise idle after the exp) instead of the slow VPU f32 divide.
    m = jnp.max(logits, axis=-1, keepdims=True)
    e = jnp.exp(logits - m)
    denom = jnp.sum(e, axis=-1, keepdims=True)
    o_ref[...] = (e * pl.reciprocal(denom, approx=True)).astype(o_ref.dtype)


def linear3_dropout_forward(x, params, *, batch_tile=None,
                            use_bf16_matmul=True):
    """Fused forward of `linear3_dropout` (eval mode).

    x: (B, C_in) float32.  params: dict with w1/b1/w2/b2/w3/b3, weights stored
    (in, out).  Returns (B, C_out) float32 softmax probabilities.
    """
    B, C_in = x.shape
    out_dtype = x.dtype
    w1, b1 = params["w1"], params["b1"]   # (C_in, 128), (1, 128)
    w2, b2 = params["w2"], params["b2"]   # (128, 64),   (1, 64)
    w3, b3 = params["w3"], params["b3"]   # (64, C_out), (1, C_out)
    C_out = w3.shape[1]

    # MXU operands in bf16 (native on v6e/v7x; avoids multi-pass f32 MXU
    # emulation and halves x HBM traffic).  Accumulation, bias, ReLU and
    # softmax stay in f32.
    compute_dtype = jnp.bfloat16 if use_bf16_matmul else x.dtype
    w1c, w2c, w3c = (w.astype(compute_dtype) for w in (w1, w2, w3))
    b1f, b2f, b3f = (b.astype(jnp.float32) for b in (b1, b2, b3))

    # --- batch tiling (rows padded to a sublane multiple of 8) -------------
    if batch_tile is None:
        tb = min(_round_up(B, 8), _DEFAULT_MAX_BATCH_TILE)
    else:
        tb = _round_up(int(batch_tile), 8)
    B_pad = _round_up(B, tb)
    grid = (B_pad // tb,)

    x_in = x
    if B_pad != B:
        x_in = jnp.pad(x, ((0, B_pad - B), (0, 0)))   # zero rows: softmax OK
    x_in = x_in.astype(compute_dtype)

    # --- explicit VMEM budget (generation-aware, instead of scoped default) -
    csz = jnp.dtype(compute_dtype).itemsize
    vmem_bytes = (
        2 * tb * C_in * csz                                   # x, 2 buffers
        + 2 * tb * C_out * 4                                  # out, 2 buffers
        + (C_in * HID1 + HID1 * HID2 + HID2 * C_out) * csz    # weights
        + (HID1 + HID2 + C_out) * 4                           # biases
        + tb * (2 * HID1 + 2 * HID2 + 4 * C_out) * 4          # f32 temporaries
    )
    # 2x margin + headroom for compiler-internal scratch, floor at the v5e
    # scoped default, capped below v7x's 64 MiB physical VMEM.
    vmem_limit = int(min(max(2 * vmem_bytes + (4 << 20), 16 << 20), 60 << 20))

    out = pl.pallas_call(
        _mlp_softmax_kernel,
        out_shape=jax.ShapeDtypeStruct((B_pad, C_out), out_dtype),
        grid_spec=pltpu.PrefetchScalarGridSpec(
            num_scalar_prefetch=0,
            grid=grid,
            in_specs=[
                pl.BlockSpec((tb, C_in), lambda i: (i, 0)),
                pl.BlockSpec((C_in, HID1), lambda i: (0, 0)),
                pl.BlockSpec((1, HID1), lambda i: (0, 0)),
                pl.BlockSpec((HID1, HID2), lambda i: (0, 0)),
                pl.BlockSpec((1, HID2), lambda i: (0, 0)),
                pl.BlockSpec((HID2, C_out), lambda i: (0, 0)),
                pl.BlockSpec((1, C_out), lambda i: (0, 0)),
            ],
            out_specs=pl.BlockSpec((tb, C_out), lambda i: (i, 0)),
        ),
        compiler_params=pltpu.CompilerParams(
            dimension_semantics=("parallel",),
            vmem_limit_bytes=vmem_limit),
    )(x_in, w1c, b1f, w2c, b2f, w3c, b3f)

    if B_pad != B:
        out = out[:B]
    return out


def init_params(key, input_channel, output_channel, dtype=jnp.float32):
    """Deterministic init mimicking nn.Linear default (uniform +/-1/sqrt(fan_in))."""
    ks = jax.random.split(key, 6)

    def lin(kw, kb, fan_in, fan_out):
        bound = 1.0 / jnp.sqrt(fan_in)
        w = jax.random.uniform(kw, (fan_in, fan_out), dtype, -bound, bound)
        b = jax.random.uniform(kb, (1, fan_out), dtype, -bound, bound)
        return w, b

    w1, b1 = lin(ks[0], ks[1], input_channel, HID1)
    w2, b2 = lin(ks[2], ks[3], HID1, HID2)
    w3, b3 = lin(ks[4], ks[5], HID2, output_channel)
    return {"w1": w1, "b1": b1, "w2": w2, "b2": b2, "w3": w3, "b3": b3}


def _reference(x, p):
    h1 = jnp.maximum(x @ p["w1"] + p["b1"], 0.0)
    h2 = jnp.maximum(h1 @ p["w2"] + p["b2"], 0.0)
    logits = h2 @ p["w3"] + p["b3"]
    return jax.nn.softmax(logits, axis=-1)


if __name__ == "__main__":
    key = jax.random.PRNGKey(0)
    k_x, k_p = jax.random.split(key)

    B, C_in, C_out = 8, 32, 16
    x = jax.random.normal(k_x, (B, C_in), dtype=jnp.float32)
    params = init_params(k_p, C_in, C_out)
    ref = _reference(x, params)

    # Default path: bf16 MXU operands, f32 accumulate (looser tolerance).
    out_bf16 = jax.block_until_ready(linear3_dropout_forward(x, params))
    assert out_bf16.shape == (B, C_out)
    assert jnp.allclose(out_bf16, ref, atol=2e-2, rtol=2e-2), "bf16 path mismatch"
    assert jnp.allclose(jnp.sum(out_bf16, axis=-1), 1.0, atol=5e-3)

    # Full-f32 path (tight tolerance vs reference; approx reciprocal ~1e-4 rel).
    out_f32 = jax.block_until_ready(
        linear3_dropout_forward(x, params, use_bf16_matmul=False))
    assert jnp.allclose(out_f32, ref, atol=5e-3, rtol=5e-3), "f32 path mismatch"

    # Ragged batch exercises padding + a multi-step (pipelined) grid.
    B2 = 10
    x2 = jax.random.normal(jax.random.PRNGKey(1), (B2, C_in), dtype=jnp.float32)
    out2 = jax.block_until_ready(
        linear3_dropout_forward(x2, params, batch_tile=8, use_bf16_matmul=False))
    assert out2.shape == (B2, C_out)
    assert jnp.allclose(out2, _reference(x2, params), atol=5e-3, rtol=5e-3)

    print("KERNEL_OK")
</pallas_src>

<mosaic_0001>
module attributes {stable_mosaic.version = 11 : i64} {
  func.func @_mlp_softmax_kernel(%arg0: i32, %arg1: memref<8x32xbf16, #tpu.memory_space<vmem>>, %arg2: memref<32x128xbf16, #tpu.memory_space<vmem>>, %arg3: memref<1x128xf32, #tpu.memory_space<vmem>>, %arg4: memref<128x64xbf16, #tpu.memory_space<vmem>>, %arg5: memref<1x64xf32, #tpu.memory_space<vmem>>, %arg6: memref<64x16xbf16, #tpu.memory_space<vmem>>, %arg7: memref<1x16xf32, #tpu.memory_space<vmem>>, %arg8: memref<8x16xf32, #tpu.memory_space<vmem>>) attributes {dimension_semantics = [#tpu.dimension_semantics<parallel>], iteration_bounds = array<i64: 1>, scalar_prefetch = 0 : i64, scratch_operands = 0 : i64, tpu.core_type = #tpu.core_type<tc>, window_params = [{transform_indices = @transform_0, window_bounds = array<i64: 8, 32>}, {pipeline_mode = #tpu.pipeline_mode<synchronous>, transform_indices = @transform_1, window_bounds = array<i64: 32, 128>}, {pipeline_mode = #tpu.pipeline_mode<synchronous>, transform_indices = @transform_2, window_bounds = array<i64: 1, 128>}, {pipeline_mode = #tpu.pipeline_mode<synchronous>, transform_indices = @transform_3, window_bounds = array<i64: 128, 64>}, {pipeline_mode = #tpu.pipeline_mode<synchronous>, transform_indices = @transform_4, window_bounds = array<i64: 1, 64>}, {pipeline_mode = #tpu.pipeline_mode<synchronous>, transform_indices = @transform_5, window_bounds = array<i64: 64, 16>}, {pipeline_mode = #tpu.pipeline_mode<synchronous>, transform_indices = @transform_6, window_bounds = array<i64: 1, 16>}, {transform_indices = @transform_7, window_bounds = array<i64: 8, 16>}]} {
    %c0 = arith.constant 0 : index
    %c0_0 = arith.constant 0 : index
    %0 = vector.load %arg1[%c0, %c0_0] : memref<8x32xbf16, #tpu.memory_space<vmem>>, vector<8x32xbf16>
    %c0_1 = arith.constant 0 : index
    %c0_2 = arith.constant 0 : index
    %1 = vector.load %arg2[%c0_1, %c0_2] : memref<32x128xbf16, #tpu.memory_space<vmem>>, vector<32x128xbf16>
    %cst = arith.constant dense<0.000000e+00> : vector<8x128xf32>
    %2 = tpu.matmul %0, %1, %cst {dimension_numbers = #tpu.dot_dimension_numbers<[1], [0], [0], [1], [0, 0, 1, 1], [], []>} : vector<8x32xbf16>, vector<32x128xbf16>, vector<8x128xf32> -> vector<8x128xf32>
    %c0_3 = arith.constant 0 : index
    %c0_4 = arith.constant 0 : index
    %3 = vector.load %arg3[%c0_3, %c0_4] : memref<1x128xf32, #tpu.memory_space<vmem>>, vector<1x128xf32>
    %4 = vector.broadcast %3 : vector<1x128xf32> to vector<8x128xf32>
    %5 = arith.addf %2, %4 : vector<8x128xf32>
    %cst_5 = arith.constant 0.000000e+00 : f32
    %6 = vector.broadcast %cst_5 : f32 to vector<8x128xf32>
    %7 = arith.maximumf %5, %6 : vector<8x128xf32>
    %8 = arith.truncf %7 : vector<8x128xf32> to vector<8x128xbf16>
    %c0_6 = arith.constant 0 : index
    %c0_7 = arith.constant 0 : index
    %9 = vector.load %arg4[%c0_6, %c0_7] : memref<128x64xbf16, #tpu.memory_space<vmem>>, vector<128x64xbf16>
    %cst_8 = arith.constant dense<0.000000e+00> : vector<8x64xf32>
    %10 = tpu.matmul %8, %9, %cst_8 {dimension_numbers = #tpu.dot_dimension_numbers<[1], [0], [0], [1], [0, 0, 1, 1], [], []>} : vector<8x128xbf16>, vector<128x64xbf16>, vector<8x64xf32> -> vector<8x64xf32>
    %c0_9 = arith.constant 0 : index
    %c0_10 = arith.constant 0 : index
    %11 = vector.load %arg5[%c0_9, %c0_10] : memref<1x64xf32, #tpu.memory_space<vmem>>, vector<1x64xf32>
    %12 = vector.broadcast %11 : vector<1x64xf32> to vector<8x64xf32>
    %13 = arith.addf %10, %12 : vector<8x64xf32>
    %cst_11 = arith.constant 0.000000e+00 : f32
    %14 = vector.broadcast %cst_11 : f32 to vector<8x64xf32>
    %15 = arith.maximumf %13, %14 : vector<8x64xf32>
    %16 = arith.truncf %15 : vector<8x64xf32> to vector<8x64xbf16>
    %c0_12 = arith.constant 0 : index
    %c0_13 = arith.constant 0 : index
    %17 = vector.load %arg6[%c0_12, %c0_13] : memref<64x16xbf16, #tpu.memory_space<vmem>>, vector<64x16xbf16>
    %cst_14 = arith.constant dense<0.000000e+00> : vector<8x16xf32>
    %18 = tpu.matmul %16, %17, %cst_14 {dimension_numbers = #tpu.dot_dimension_numbers<[1], [0], [0], [1], [0, 0, 1, 1], [], []>} : vector<8x64xbf16>, vector<64x16xbf16>, vector<8x16xf32> -> vector<8x16xf32>
    %c0_15 = arith.constant 0 : index
    %c0_16 = arith.constant 0 : index
    %19 = vector.load %arg7[%c0_15, %c0_16] : memref<1x16xf32, #tpu.memory_space<vmem>>, vector<1x16xf32>
    %20 = vector.broadcast %19 : vector<1x16xf32> to vector<8x16xf32>
    %21 = arith.addf %18, %20 : vector<8x16xf32>
    %cst_17 = arith.constant dense<0xFF800000> : vector<8xf32>
    %22 = vector.multi_reduction <maximumf>, %21, %cst_17 [1] : vector<8x16xf32> to vector<8xf32>
    %23 = vector.shape_cast %22 : vector<8xf32> to vector<8x1xf32>
    %24 = vector.broadcast %23 : vector<8x1xf32> to vector<8x16xf32>
    %25 = arith.subf %21, %24 : vector<8x16xf32>
    %26 = math.exp %25 : vector<8x16xf32>
    %cst_18 = arith.constant dense<0.000000e+00> : vector<8xf32>
    %27 = vector.multi_reduction <add>, %26, %cst_18 [1] : vector<8x16xf32> to vector<8xf32>
    %28 = vector.shape_cast %27 : vector<8xf32> to vector<8x1xf32>
    %29 = tpu.reciprocal %28 {approx = true} : vector<8x1xf32> -> vector<8x1xf32>
    %30 = vector.broadcast %29 : vector<8x1xf32> to vector<8x16xf32>
    %31 = arith.mulf %26, %30 : vector<8x16xf32>
    %c0_19 = arith.constant 0 : index
    %c0_20 = arith.constant 0 : index
    %32 = vector.load %arg8[%c0_19, %c0_20] : memref<8x16xf32, #tpu.memory_space<vmem>>, vector<8x16xf32>
    tpu.vector_store %arg8[%c0_19, %c0_20], %31 {strides = array<i32>} : memref<8x16xf32, #tpu.memory_space<vmem>>, vector<8x16xf32>,
    return
  }
  func.func @transform_0(%arg0: i32) -> (i32, i32) {
    %c0_i32 = arith.constant 0 : i32
    %c0_i32_0 = arith.constant 0 : i32
    return %arg0, %c0_i32 : i32, i32
  }
  func.func @transform_1(%arg0: i32) -> (i32, i32) {
    %c0_i32 = arith.constant 0 : i32
    %c0_i32_0 = arith.constant 0 : i32
    %c0_i32_1 = arith.constant 0 : i32
    return %c0_i32, %c0_i32_0 : i32, i32
  }
  func.func @transform_2(%arg0: i32) -> (i32, i32) {
    %c0_i32 = arith.constant 0 : i32
    %c0_i32_0 = arith.constant 0 : i32
    %c0_i32_1 = arith.constant 0 : i32
    return %c0_i32, %c0_i32_0 : i32, i32
  }
  func.func @transform_3(%arg0: i32) -> (i32, i32) {
    %c0_i32 = arith.constant 0 : i32
    %c0_i32_0 = arith.constant 0 : i32
    %c0_i32_1 = arith.constant 0 : i32
    return %c0_i32, %c0_i32_0 : i32, i32
  }
  func.func @transform_4(%arg0: i32) -> (i32, i32) {
    %c0_i32 = arith.constant 0 : i32
    %c0_i32_0 = arith.constant 0 : i32
    %c0_i32_1 = arith.constant 0 : i32
    return %c0_i32, %c0_i32_0 : i32, i32
  }
  func.func @transform_5(%arg0: i32) -> (i32, i32) {
    %c0_i32 = arith.constant 0 : i32
    %c0_i32_0 = arith.constant 0 : i32
    %c0_i32_1 = arith.constant 0 : i32
    return %c0_i32, %c0_i32_0 : i32, i32
  }
  func.func @transform_6(%arg0: i32) -> (i32, i32) {
    %c0_i32 = arith.constant 0 : i32
    %c0_i32_0 = arith.constant 0 : i32
    %c0_i32_1 = arith.constant 0 : i32
    return %c0_i32, %c0_i32_0 : i32, i32
  }
  func.func @transform_7(%arg0: i32) -> (i32, i32) {
    %c0_i32 = arith.constant 0 : i32
    %c0_i32_0 = arith.constant 0 : i32
    return %arg0, %c0_i32 : i32, i32
  }
}

</mosaic_0001>

<bundles_post_ra>
// kernel: tpu_custom_call.1
= control target key start
LH: loop header
LB: loop body
LE: loop exit
PB: predicated region body
PF: predicated region fallthrough
CT: control target
= control target key end

     0   :  { %v440_v1 = vmov 0.0   ;;  %vm441_vm0 = vmmov 0   ;;  %vm52_vm1 = vcmask 261120   ;;  %s546_s0 = inlined_call_operand.vmem [shape: bf16[8,32], index: 0, kind: input, shape index: {}]   ;;  %s547_s1 = inlined_call_operand.vmem [shape: bf16[32,128], index: 1, kind: input, shape index: {}]   ;;  %s548_s2 = inlined_call_operand.vmem [shape: f32[1,128], index: 2, kind: input, shape index: {}]   ;;  %s549_s3 = inlined_call_operand.vmem [shape: bf16[128,64], index: 3, kind: input, shape index: {}]   ;;  %s550_s4 = inlined_call_operand.vmem [shape: f32[1,64], index: 4, kind: input, shape index: {}]   ;;  %s551_s5 = inlined_call_operand.vmem [shape: bf16[64,16], index: 5, kind: input, shape index: {}]   ;;  %s552_s6 = inlined_call_operand.vmem [shape: f32[1,16], index: 6, kind: input, shape index: {}]   ;;  %s553_s7 = inlined_call_operand.hbm [shape: f32[8,16], index: 7, kind: output, shape index: {}]  }
   0x1   :  { %v400_v0 = vld [vmem:[%s547_s1 + $0x8] sm:$0xff]   ;;  %357 = vmatprep.subr.bf16.mxu0 %v440_v1  ;;  %365 = vmatprep.subr.bf16.mxu1 %v440_v1  ;;  %v401_v2 = vld [vmem:[%s547_s1] sm:$0xff]   ;;  %v402_v3 = vld [vmem:[%s549_s3 + $0x38] sm:$0xff]  }
   0x2   :  { %358 = vmatpush3.bf16.msra.mxu0 %v400_v0  ;;  %361 = vmatprep.mubr.msk.bf16.mxu0 %vm441_vm0, %v440_v1  ;;  %v403_v4 = vld [vmem:[%s549_s3 + $0x30] sm:$0xff]   ;;  %v28_v5 = vld [vmem:[%s546_s0] sm:$0xf]  ;;  %v404_v6 = vld [vmem:[%s549_s3 + $0x28] sm:$0xff]  }
   0x3   :  { %359 = vmatprep.subr.bf16.mxu0 %v440_v1  ;;  %381 = vmatprep.mubr.msk.bf16.mxu1 %vm441_vm0, %v440_v1  ;;  %v405_v7 = vld [vmem:[%s549_s3 + $0x20] sm:$0xff]  }
   0x4   :  { %366 = vmatpush3.bf16.msra.mxu1 %v402_v3 }
   0x5   :  { %367 = vmatprep.subr.bf16.mxu1 %v440_v1 }
   0x6   :  { %360 = vmatpush3.bf16.msra.mxu0 %v401_v2 }
   0x7   :  { %385 = vmatprep.subr.bf16.mxu0 %v440_v1 }
   0x8   :  { %368 = vmatpush3.bf16.msra.mxu1 %v403_v4 }
   0x9   :  { %362 = vmatmul.mubr.msk.bf16.vlgmr.msra.gmra.mxu0 %vm52_vm1, %v28_v5  ;;  %369 = vmatprep.subr.bf16.mxu1 %v440_v1 }
   0xa   :  { %393 = vmatprep.mubr.msk.bf16.mxu0 %vm441_vm0, %v440_v1 }
   0xc   :  { %370 = vmatpush3.bf16.msra.mxu1 %v404_v6 }
   0xd   :  { %12 = vsyncpa [#allocation3], 0  ;;  %371 = vmatprep.subr.bf16.mxu1 %v440_v1  ;;  %v406_v8 = vld [vmem:[%s549_s3 + $0x18] sm:$0xff]   ;;  %v407_v9 = vld [vmem:[%s549_s3 + $0x10] sm:$0xff]   ;;  %vm250_vm2 = vcmask 523264   ;;  %vm294_vm3 = vcmask 130048  }
   0xe   :  { %v408_v10 = vld [vmem:[%s549_s3 + $0x8] sm:$0xff]   ;;  %v409_v11 = vld [vmem:[%s549_s3] sm:$0xff]   ;;  %v410_v12 = vld [vmem:[%s551_s5 + $0x18] sm:$0xff]  }
   0xf   :  { %386 = vmatpush3.bf16.msra.mxu0 %v410_v12  ;;  %v411_v13 = vld [vmem:[%s551_s5 + $0x10] sm:$0xff]   ;;  %v321_v14 = vld [vmem:[%s548_s2] ss:$0 sm:$0xff]  ;;  %v412_v22 = vld [vmem:[%s551_s5 + $0x8] sm:$0xff]  }
  0x10   :  { %372 = vmatpush3.bf16.msra.mxu1 %v405_v7  ;;  %387 = vmatprep.subr.bf16.mxu0 %v440_v1  ;;  %v413_v23 = vld [vmem:[%s551_s5] sm:$0xff]  }
  0x11   :  { %373 = vmatprep.subr.bf16.mxu1 %v440_v1  ;;  %v325_v24 = vld [vmem:[%s550_s4] ss:$0 sm:$0xff]  ;;  %s442_s4 = smov [#allocation2]  }
  0x12   :  { %v334_v32 = vld [vmem:[%s552_s6] ss:$0 sm:$0xff]  ;;  %s313_s5 = sshll.u32 %s442_s4, 4  ;;  %s314_s5 = int_to_ptr.vmem [resolvable:$true] %s313_s5 }
  0x13   :  { %388 = vmatpush3.bf16.msra.mxu0 %v411_v13  ;;  %s418_s6 = scalar_lea.vmem %s314_s5, 128  ;;  %p423_p1 = scmp.lt.s32.totalorder %s314_s5, %s314_s5 }
  0x14   :  { %374 = vmatpush3.bf16.msra.mxu1 %v406_v8  ;;  %389 = vmatprep.subr.bf16.mxu0 %v440_v1  ;;  %p419_p0 = scmp.ne.s32.totalorder %s314_s5, %s418_s6  ;;  %p424_p2 = scmp.lt.s32.totalorder %s418_s6, %s418_s6 }
  0x15   :  { %375 = vmatprep.subr.bf16.mxu1 %v440_v1 }
  0x16   :  { %p425_p3 = por %p424_p2, %p423_p1 }
  0x17   :  { %390 = vmatpush3.bf16.msra.mxu0 %v412_v22 }
  0x18   :  { %376 = vmatpush3.bf16.msra.mxu1 %v407_v9  ;;  %391 = vmatprep.subr.bf16.mxu0 %v440_v1  ;;  %p426_p4 = pnand %p425_p3, %p419_p0 }
  0x19   :  { %377 = vmatprep.subr.bf16.mxu1 %v440_v1 }
  0x1b   :  { %392 = vmatpush3.bf16.msra.mxu0 %v413_v23 }
  0x1c   :  { %378 = vmatpush3.bf16.msra.mxu1 %v408_v10 }
  0x1d   :  { %379 = vmatprep.subr.bf16.mxu1 %v440_v1 }
  0x20   :  { %380 = vmatpush3.bf16.msra.mxu1 %v409_v11 }
  0xc9   :  { %v90_v15 = vpop.f32.mrf.mxu0 }
  0xca   :  { %v91_v16 = vadd.f32 %v321_v14, %v90_v15 }
  0xcb   :  { %v363_v17 = vpop.f32.mrf.mxu0 }
  0xcc   :  { %v96_v18 = vmax.f32 %v91_v16, 0.0 }
  0xcd   :  { %v93_v19 = vpop.f32.mrf.mxu0 }
  0xce   :  { %v97_v20 = vpack.c.bf16 %v96_v18, %v96_v18 }
  0xcf   :  { %v364_v21 = vpop.f32.mrf.mxu0 }
  0xd0   :  { %382 = vmatmul.mubr.bf16.vlgmr.msra.gmra.mxu1 %v97_v20 }
 0x190   :  { %v203_v25 = vpop.f32.mrf.mxu1 }
 0x191   :  { %v204_v26 = vadd.f32 %v325_v24, %v203_v25 }
 0x192   :  { %v383_v27 = vpop.f32.mrf.mxu1 }
 0x193   :  { %v209_v28 = vmax.f32 %v204_v26, 0.0 }
 0x194   :  { %v206_v29 = vpop.f32.mrf.mxu1 }
 0x195   :  { %v210_v30 = vpack.c.bf16 %v209_v28, %v209_v28 }
 0x196   :  { %v384_v31 = vpop.f32.mrf.mxu1 }
 0x197   :  { %394 = vmatmul.mubr.msk.bf16.vlgmr.msra.gmra.mxu0 %vm250_vm2, %v210_v30 }
 0x257   :  { %v288_v33 = vpop.f32.mrf.mxu0 }
 0x258   :  { %v289_v34 = vadd.f32 %v334_v32, %v288_v33 }
 0x259   :  { %v395_v35 = vpop.f32.mrf.mxu0 }
 0x25a   :  { %v295_v36 = vsel %vm294_vm3, %v289_v34, -inf }
 0x25b   :  { %296 = vmax.xlane.f32.xlu0 %v295_v36  ;;  %v291_v37 = vpop.f32.mrf.mxu0 }
 0x25d   :  { %v396_v38 = vpop.f32.mrf.mxu0 }
 0x2e4   :  { %v297_v39 = vpop.xlane.xlu0 %296 }
 0x2e5   :  { %v298_v40 = vsub.f32 %v289_v34, %v297_v39 }
 0x2e7   :  { %v299_v41 = vmul.f32 1.442695, %v298_v40 }
 0x2e9   :  { %414 = vpow2.f32 %v299_v41 }
 0x2f6   :  { %v415_v42 = vpop.eup %414 }
 0x2f7   :  { %v301_v43 = vsel %vm294_vm3, %v415_v42, 0.0 }
 0x2f8   :  { %302 = vadd.xlane.f32.xlu0 %v301_v43 }
 0x381   :  { %v303_v44 = vpop.xlane.xlu0 %302 }
 0x382   :  { %416 = vrcp.f32 %v303_v44 }
 0x38f   :  { %v417_v45 = vpop.eup %416 }
 0x390   :  { %v305_v46 = vmul.f32 %v417_v45, %v415_v42 }
 0x392   :  { %306 = vst.msk [vmem:[#allocation2] sm:$0xff] %vm294_vm3, %v305_v46 }
 0x393   :  { %429 = shalt.err (!%p426_p4)
}
 0x394   :  { %316 = dma.vmem_to_hbm [thread:$0]  %s314_s5, 128, %s553_s7, [#allocation3]  }
 0x395   :  { %438 = dma.done.wait [#allocation3], 128  }
 0x396   :  { %439 = vsyncadd [#allocation3], 4294967168 }
 0x397   :  { %320 = vsyncpa [#allocation3], 1 }

</bundles_post_ra>
